<compile_context>
chip_gen: v6e
topology: v6e:2x2x1
jax: 0.10.0
libtpu: 0.0.40
codegen_flags: <defaults>
</compile_context>

<pallas_src>
import jax
import jax.numpy as jnp
from jax.experimental import pallas as pl
from jax.experimental.pallas import tpu as pltpu


_LANE = 128


# ---------------------------------------------------------------------------
# Kernels
# ---------------------------------------------------------------------------
def _outconv_kernel_small(x_ref, w_ref, b_ref, o_ref):
    """Unrolled VPU path for small channel counts, 2D-packed spatial blocks.

    x_ref: (C_in, S, 128) VMEM; w_ref: (C_out*C_in,) f32 SMEM;
    b_ref: (C_out,) f32 SMEM; o_ref: (C_out, S, 128) VMEM.
    """
    c_in = x_ref.shape[0]
    c_out = o_ref.shape[0]
    for o in range(c_out):                                   # static unroll
        acc = x_ref[0].astype(jnp.float32) * w_ref[o * c_in + 0]
        for c in range(1, c_in):
            acc = acc + x_ref[c].astype(jnp.float32) * w_ref[o * c_in + c]
        # Store each channel as soon as it is done: full unmasked stores and
        # live vregs capped at ~one (S, 128) accumulator slab.
        o_ref[o] = jnp.tanh(acc + b_ref[o]).astype(o_ref.dtype)


def _outconv_kernel_big(x_ref, w_ref, b_ref, o_ref):
    """Generic MXU path (larger channel counts or HW % 128 != 0).

    x_ref: (C_in, T); w_ref: (C_out, C_in) native dtype; b_ref: (C_out, 1) f32;
    o_ref: (C_out, T).  Per-column matmul: garbage edge lanes stay in-lane.
    """
    acc = jnp.dot(w_ref[...], x_ref[...], preferred_element_type=jnp.float32)
    o_ref[...] = jnp.tanh(acc + b_ref[...]).astype(o_ref.dtype)


# ---------------------------------------------------------------------------
# Wrapper
# ---------------------------------------------------------------------------
def _vmem_capacity_bytes():
    try:
        return int(pltpu.get_tpu_info().vmem_capacity_bytes)
    except Exception:
        return 64 << 20            # conservative fallback: v7x physical VMEM


def _round_down(v, m):
    return (v // m) * m


def outconv_forward(x_nchw, weight, bias, *, target_block_bytes=4 << 20,
                    vpu_channel_limit=16):
    """1x1 Conv2d + Tanh.

    x_nchw: (N, C_in, H, W); weight: (C_out, C_in, 1, 1); bias: (C_out,).
    Returns (N, C_out, H, W) in x's dtype.
    """
    N, C_in, H, W = x_nchw.shape
    C_out = weight.shape[0]
    HW = H * W
    dtype = x_nchw.dtype
    itemsize = jnp.dtype(dtype).itemsize
    sub = max(8, 32 // max(itemsize, 1))      # sublane quantum: 8 f32 / 16 bf16

    # Generation-aware VMEM budgeting, leaving headroom for Mosaic scratch.
    vmem_cap = _vmem_capacity_bytes()
    vmem_soft_limit = max(min(vmem_cap * 3 // 4, vmem_cap - (8 << 20)), 32 << 20)
    block_budget = max(vmem_soft_limit - (8 << 20), 8 << 20)

    use_vpu = (C_in <= vpu_channel_limit and C_out <= vpu_channel_limit
               and HW % _LANE == 0)

    if use_vpu:
        # ---- VPU path: spatial axis packed as (rows, 128) full-vreg slabs ----
        n_rows = HW // _LANE
        bytes_per_row = (C_in + C_out) * _LANE * itemsize
        rows = min(target_block_bytes // bytes_per_row,
                   block_budget // (2 * bytes_per_row))
        rows = _round_down(rows, sub)
        if rows < sub:
            rows = min(sub, n_rows)
        if rows >= n_rows:
            rows = n_rows                      # full-extent block (always legal)
            if N == 1 and n_rows >= 2 * sub:
                # v7x has 2 TensorCores: keep >= 2 grid steps so both get work.
                rows = -(-((n_rows + 1) // 2) // sub) * sub

        grid = (N, pl.cdiv(n_rows, rows))
        x4 = x_nchw.reshape(N, C_in, n_rows, _LANE)          # free reshape
        out_shape = jax.ShapeDtypeStruct((N, C_out, n_rows, _LANE), dtype)

        # Double-buffered in + out blocks (channel dim is ahead of the tiled
        # last-two dims, so no sublane padding applies to it here).
        vmem_est = 2 * (C_in + C_out) * rows * _LANE * itemsize
        vmem_limit = int(min(max(vmem_est + (16 << 20), 32 << 20),
                             vmem_soft_limit))
        compiler_params = pltpu.CompilerParams(
            dimension_semantics=("parallel", "parallel"),
            vmem_limit_bytes=vmem_limit)

        out4 = pl.pallas_call(
            _outconv_kernel_small,
            out_shape=out_shape,
            grid=grid,
            in_specs=[
                pl.BlockSpec((None, C_in, rows, _LANE),
                             lambda n, j: (n, 0, j, 0)),
                pl.BlockSpec(memory_space=pltpu.MemorySpace.SMEM),
                pl.BlockSpec(memory_space=pltpu.MemorySpace.SMEM),
            ],
            out_specs=pl.BlockSpec((None, C_out, rows, _LANE),
                                   lambda n, j: (n, 0, j, 0)),
            compiler_params=compiler_params,
        )(x4,
          weight.reshape(C_out * C_in).astype(jnp.float32),
          bias.reshape(C_out).astype(jnp.float32))
        return out4.reshape(N, C_out, H, W)

    # ---- Generic MXU path (big channel mixes, or HW not a multiple of 128) ---
    def _pad(c):
        return -(-c // sub) * sub

    bytes_per_lane = (_pad(C_in) + _pad(C_out)) * itemsize
    tile = min(target_block_bytes // bytes_per_lane,
               block_budget // (2 * bytes_per_lane))
    tile = _round_down(tile, _LANE)
    if tile < _LANE:
        tile = min(_LANE, HW)
    if tile >= HW:
        tile = HW                              # full-extent block (always legal)
        if N == 1 and HW >= 2 * _LANE:
            tile = -(-((HW + 1) // 2) // _LANE) * _LANE

    grid = (N, pl.cdiv(HW, tile))
    x3 = x_nchw.reshape(N, C_in, HW)                          # free reshape
    out_shape = jax.ShapeDtypeStruct((N, C_out, HW), dtype)

    vmem_est = (2 * (_pad(C_in) + _pad(C_out)) * tile * itemsize
                + _pad(C_out) * max(_pad(C_in), _LANE) * itemsize)
    vmem_limit = int(min(max(vmem_est + (16 << 20), 32 << 20), vmem_soft_limit))
    compiler_params = pltpu.CompilerParams(
        dimension_semantics=("parallel", "parallel"),
        vmem_limit_bytes=vmem_limit)

    out3 = pl.pallas_call(
        _outconv_kernel_big,
        out_shape=out_shape,
        grid=grid,
        in_specs=[
            pl.BlockSpec((None, C_in, tile), lambda n, j: (n, 0, j)),
            pl.BlockSpec((C_out, C_in), lambda n, j: (0, 0)),
            pl.BlockSpec((C_out, 1), lambda n, j: (0, 0)),
        ],
        out_specs=pl.BlockSpec((None, C_out, tile), lambda n, j: (n, 0, j)),
        compiler_params=compiler_params,
    )(x3,
      weight.reshape(C_out, C_in).astype(dtype),
      bias.reshape(C_out, 1).astype(jnp.float32))
    return out3.reshape(N, C_out, H, W)


if __name__ == "__main__":
    key = jax.random.PRNGKey(0)
    k_x, k_w, k_b = jax.random.split(key, 3)

    batch, in_channels, out_channels, spatial = 2, 4, 3, 16

    x = jax.random.normal(k_x, (batch, in_channels, spatial, spatial),
                          jnp.float32)
    # Conv2d-shaped params: weight (C_out, C_in, 1, 1), bias (C_out,)
    fan_in = in_channels  # kernel_size = 1
    bound = 1.0 / (fan_in ** 0.5)
    weight = jax.random.uniform(k_w, (out_channels, in_channels, 1, 1),
                                jnp.float32, -bound, bound)
    bias = jax.random.uniform(k_b, (out_channels,), jnp.float32, -bound, bound)

    out = outconv_forward(x, weight, bias)
    jax.block_until_ready(out)

    # Reference in plain JAX (1x1 conv == channel matmul, then tanh)
    ref = jnp.tanh(
        jnp.einsum("nchw,oc->nohw", x,
                   weight.reshape(out_channels, in_channels))
        + bias[None, :, None, None]
    )
    assert out.shape == (batch, out_channels, spatial, spatial)
    assert jnp.allclose(out, ref, atol=1e-5), "mismatch vs reference"

    print("KERNEL_OK")
</pallas_src>

<mosaic_0001>
module attributes {stable_mosaic.version = 11 : i64} {
  func.func @_outconv_kernel_small(%arg0: i32, %arg1: i32, %arg2: memref<1x4x2x128xf32, #tpu.memory_space<vmem>>, %arg3: memref<12xf32, #tpu.memory_space<smem>>, %arg4: memref<3xf32, #tpu.memory_space<smem>>, %arg5: memref<1x3x2x128xf32, #tpu.memory_space<vmem>>) attributes {dimension_semantics = [#tpu.dimension_semantics<parallel>, #tpu.dimension_semantics<parallel>], iteration_bounds = array<i64: 2, 1>, scalar_prefetch = 0 : i64, scratch_operands = 0 : i64, tpu.core_type = #tpu.core_type<tc>, window_params = [{transform_indices = @transform_0, window_bounds = array<i64: 1, 4, 2, 128>}, {transform_indices = @transform_1, window_bounds = array<i64: 12>}, {transform_indices = @transform_2, window_bounds = array<i64: 3>}, {transform_indices = @transform_3, window_bounds = array<i64: 1, 3, 2, 128>}]} {
    %c0 = arith.constant 0 : index
    %c0_0 = arith.constant 0 : index
    %c0_1 = arith.constant 0 : index
    %c0_2 = arith.constant 0 : index
    %0 = vector.load %arg2[%c0, %c0_0, %c0_1, %c0_2] : memref<1x4x2x128xf32, #tpu.memory_space<vmem>>, vector<1x1x2x128xf32>
    %1 = vector.shape_cast %0 : vector<1x1x2x128xf32> to vector<2x128xf32>
    %c0_3 = arith.constant 0 : index
    %2 = memref.load %arg3[%c0_3] : memref<12xf32, #tpu.memory_space<smem>>
    %3 = vector.broadcast %2 : f32 to vector<2x128xf32>
    %4 = arith.mulf %1, %3 : vector<2x128xf32>
    %c0_4 = arith.constant 0 : index
    %c1 = arith.constant 1 : index
    %c0_5 = arith.constant 0 : index
    %c0_6 = arith.constant 0 : index
    %5 = vector.load %arg2[%c0_4, %c1, %c0_5, %c0_6] : memref<1x4x2x128xf32, #tpu.memory_space<vmem>>, vector<1x1x2x128xf32>
    %6 = vector.shape_cast %5 : vector<1x1x2x128xf32> to vector<2x128xf32>
    %c1_7 = arith.constant 1 : index
    %7 = memref.load %arg3[%c1_7] : memref<12xf32, #tpu.memory_space<smem>>
    %8 = vector.broadcast %7 : f32 to vector<2x128xf32>
    %9 = arith.mulf %6, %8 : vector<2x128xf32>
    %10 = arith.addf %4, %9 : vector<2x128xf32>
    %c0_8 = arith.constant 0 : index
    %c2 = arith.constant 2 : index
    %c0_9 = arith.constant 0 : index
    %c0_10 = arith.constant 0 : index
    %11 = vector.load %arg2[%c0_8, %c2, %c0_9, %c0_10] : memref<1x4x2x128xf32, #tpu.memory_space<vmem>>, vector<1x1x2x128xf32>
    %12 = vector.shape_cast %11 : vector<1x1x2x128xf32> to vector<2x128xf32>
    %c2_11 = arith.constant 2 : index
    %13 = memref.load %arg3[%c2_11] : memref<12xf32, #tpu.memory_space<smem>>
    %14 = vector.broadcast %13 : f32 to vector<2x128xf32>
    %15 = arith.mulf %12, %14 : vector<2x128xf32>
    %16 = arith.addf %10, %15 : vector<2x128xf32>
    %c0_12 = arith.constant 0 : index
    %c3 = arith.constant 3 : index
    %c0_13 = arith.constant 0 : index
    %c0_14 = arith.constant 0 : index
    %17 = vector.load %arg2[%c0_12, %c3, %c0_13, %c0_14] : memref<1x4x2x128xf32, #tpu.memory_space<vmem>>, vector<1x1x2x128xf32>
    %18 = vector.shape_cast %17 : vector<1x1x2x128xf32> to vector<2x128xf32>
    %c3_15 = arith.constant 3 : index
    %19 = memref.load %arg3[%c3_15] : memref<12xf32, #tpu.memory_space<smem>>
    %20 = vector.broadcast %19 : f32 to vector<2x128xf32>
    %21 = arith.mulf %18, %20 : vector<2x128xf32>
    %22 = arith.addf %16, %21 : vector<2x128xf32>
    %c0_16 = arith.constant 0 : index
    %23 = memref.load %arg4[%c0_16] : memref<3xf32, #tpu.memory_space<smem>>
    %24 = vector.broadcast %23 : f32 to vector<2x128xf32>
    %25 = arith.addf %22, %24 : vector<2x128xf32>
    %26 = math.tanh %25 : vector<2x128xf32>
    %c0_17 = arith.constant 0 : index
    %c0_18 = arith.constant 0 : index
    %c0_19 = arith.constant 0 : index
    %c0_20 = arith.constant 0 : index
    %27 = vector.load %arg5[%c0_17, %c0_18, %c0_19, %c0_20] : memref<1x3x2x128xf32, #tpu.memory_space<vmem>>, vector<1x1x2x128xf32>
    %28 = vector.shape_cast %27 : vector<1x1x2x128xf32> to vector<2x128xf32>
    %29 = vector.shape_cast %26 : vector<2x128xf32> to vector<1x1x2x128xf32>
    tpu.vector_store %arg5[%c0_17, %c0_18, %c0_19, %c0_20], %29 {strides = array<i32>} : memref<1x3x2x128xf32, #tpu.memory_space<vmem>>, vector<1x1x2x128xf32>,
    %c0_21 = arith.constant 0 : index
    %c0_22 = arith.constant 0 : index
    %c0_23 = arith.constant 0 : index
    %c0_24 = arith.constant 0 : index
    %30 = vector.load %arg2[%c0_21, %c0_22, %c0_23, %c0_24] : memref<1x4x2x128xf32, #tpu.memory_space<vmem>>, vector<1x1x2x128xf32>
    %31 = vector.shape_cast %30 : vector<1x1x2x128xf32> to vector<2x128xf32>
    %c4 = arith.constant 4 : index
    %32 = memref.load %arg3[%c4] : memref<12xf32, #tpu.memory_space<smem>>
    %33 = vector.broadcast %32 : f32 to vector<2x128xf32>
    %34 = arith.mulf %31, %33 : vector<2x128xf32>
    %c0_25 = arith.constant 0 : index
    %c1_26 = arith.constant 1 : index
    %c0_27 = arith.constant 0 : index
    %c0_28 = arith.constant 0 : index
    %35 = vector.load %arg2[%c0_25, %c1_26, %c0_27, %c0_28] : memref<1x4x2x128xf32, #tpu.memory_space<vmem>>, vector<1x1x2x128xf32>
    %36 = vector.shape_cast %35 : vector<1x1x2x128xf32> to vector<2x128xf32>
    %c5 = arith.constant 5 : index
    %37 = memref.load %arg3[%c5] : memref<12xf32, #tpu.memory_space<smem>>
    %38 = vector.broadcast %37 : f32 to vector<2x128xf32>
    %39 = arith.mulf %36, %38 : vector<2x128xf32>
    %40 = arith.addf %34, %39 : vector<2x128xf32>
    %c0_29 = arith.constant 0 : index
    %c2_30 = arith.constant 2 : index
    %c0_31 = arith.constant 0 : index
    %c0_32 = arith.constant 0 : index
    %41 = vector.load %arg2[%c0_29, %c2_30, %c0_31, %c0_32] : memref<1x4x2x128xf32, #tpu.memory_space<vmem>>, vector<1x1x2x128xf32>
    %42 = vector.shape_cast %41 : vector<1x1x2x128xf32> to vector<2x128xf32>
    %c6 = arith.constant 6 : index
    %43 = memref.load %arg3[%c6] : memref<12xf32, #tpu.memory_space<smem>>
    %44 = vector.broadcast %43 : f32 to vector<2x128xf32>
    %45 = arith.mulf %42, %44 : vector<2x128xf32>
    %46 = arith.addf %40, %45 : vector<2x128xf32>
    %c0_33 = arith.constant 0 : index
    %c3_34 = arith.constant 3 : index
    %c0_35 = arith.constant 0 : index
    %c0_36 = arith.constant 0 : index
    %47 = vector.load %arg2[%c0_33, %c3_34, %c0_35, %c0_36] : memref<1x4x2x128xf32, #tpu.memory_space<vmem>>, vector<1x1x2x128xf32>
    %48 = vector.shape_cast %47 : vector<1x1x2x128xf32> to vector<2x128xf32>
    %c7 = arith.constant 7 : index
    %49 = memref.load %arg3[%c7] : memref<12xf32, #tpu.memory_space<smem>>
    %50 = vector.broadcast %49 : f32 to vector<2x128xf32>
    %51 = arith.mulf %48, %50 : vector<2x128xf32>
    %52 = arith.addf %46, %51 : vector<2x128xf32>
    %c1_37 = arith.constant 1 : index
    %53 = memref.load %arg4[%c1_37] : memref<3xf32, #tpu.memory_space<smem>>
    %54 = vector.broadcast %53 : f32 to vector<2x128xf32>
    %55 = arith.addf %52, %54 : vector<2x128xf32>
    %56 = math.tanh %55 : vector<2x128xf32>
    %c0_38 = arith.constant 0 : index
    %c1_39 = arith.constant 1 : index
    %c0_40 = arith.constant 0 : index
    %c0_41 = arith.constant 0 : index
    %57 = vector.load %arg5[%c0_38, %c1_39, %c0_40, %c0_41] : memref<1x3x2x128xf32, #tpu.memory_space<vmem>>, vector<1x1x2x128xf32>
    %58 = vector.shape_cast %57 : vector<1x1x2x128xf32> to vector<2x128xf32>
    %59 = vector.shape_cast %56 : vector<2x128xf32> to vector<1x1x2x128xf32>
    tpu.vector_store %arg5[%c0_38, %c1_39, %c0_40, %c0_41], %59 {strides = array<i32>} : memref<1x3x2x128xf32, #tpu.memory_space<vmem>>, vector<1x1x2x128xf32>,
    %c0_42 = arith.constant 0 : index
    %c0_43 = arith.constant 0 : index
    %c0_44 = arith.constant 0 : index
    %c0_45 = arith.constant 0 : index
    %60 = vector.load %arg2[%c0_42, %c0_43, %c0_44, %c0_45] : memref<1x4x2x128xf32, #tpu.memory_space<vmem>>, vector<1x1x2x128xf32>
    %61 = vector.shape_cast %60 : vector<1x1x2x128xf32> to vector<2x128xf32>
    %c8 = arith.constant 8 : index
    %62 = memref.load %arg3[%c8] : memref<12xf32, #tpu.memory_space<smem>>
    %63 = vector.broadcast %62 : f32 to vector<2x128xf32>
    %64 = arith.mulf %61, %63 : vector<2x128xf32>
    %c0_46 = arith.constant 0 : index
    %c1_47 = arith.constant 1 : index
    %c0_48 = arith.constant 0 : index
    %c0_49 = arith.constant 0 : index
    %65 = vector.load %arg2[%c0_46, %c1_47, %c0_48, %c0_49] : memref<1x4x2x128xf32, #tpu.memory_space<vmem>>, vector<1x1x2x128xf32>
    %66 = vector.shape_cast %65 : vector<1x1x2x128xf32> to vector<2x128xf32>
    %c9 = arith.constant 9 : index
    %67 = memref.load %arg3[%c9] : memref<12xf32, #tpu.memory_space<smem>>
    %68 = vector.broadcast %67 : f32 to vector<2x128xf32>
    %69 = arith.mulf %66, %68 : vector<2x128xf32>
    %70 = arith.addf %64, %69 : vector<2x128xf32>
    %c0_50 = arith.constant 0 : index
    %c2_51 = arith.constant 2 : index
    %c0_52 = arith.constant 0 : index
    %c0_53 = arith.constant 0 : index
    %71 = vector.load %arg2[%c0_50, %c2_51, %c0_52, %c0_53] : memref<1x4x2x128xf32, #tpu.memory_space<vmem>>, vector<1x1x2x128xf32>
    %72 = vector.shape_cast %71 : vector<1x1x2x128xf32> to vector<2x128xf32>
    %c10 = arith.constant 10 : index
    %73 = memref.load %arg3[%c10] : memref<12xf32, #tpu.memory_space<smem>>
    %74 = vector.broadcast %73 : f32 to vector<2x128xf32>
    %75 = arith.mulf %72, %74 : vector<2x128xf32>
    %76 = arith.addf %70, %75 : vector<2x128xf32>
    %c0_54 = arith.constant 0 : index
    %c3_55 = arith.constant 3 : index
    %c0_56 = arith.constant 0 : index
    %c0_57 = arith.constant 0 : index
    %77 = vector.load %arg2[%c0_54, %c3_55, %c0_56, %c0_57] : memref<1x4x2x128xf32, #tpu.memory_space<vmem>>, vector<1x1x2x128xf32>
    %78 = vector.shape_cast %77 : vector<1x1x2x128xf32> to vector<2x128xf32>
    %c11 = arith.constant 11 : index
    %79 = memref.load %arg3[%c11] : memref<12xf32, #tpu.memory_space<smem>>
    %80 = vector.broadcast %79 : f32 to vector<2x128xf32>
    %81 = arith.mulf %78, %80 : vector<2x128xf32>
    %82 = arith.addf %76, %81 : vector<2x128xf32>
    %c2_58 = arith.constant 2 : index
    %83 = memref.load %arg4[%c2_58] : memref<3xf32, #tpu.memory_space<smem>>
    %84 = vector.broadcast %83 : f32 to vector<2x128xf32>
    %85 = arith.addf %82, %84 : vector<2x128xf32>
    %86 = math.tanh %85 : vector<2x128xf32>
    %c0_59 = arith.constant 0 : index
    %c2_60 = arith.constant 2 : index
    %c0_61 = arith.constant 0 : index
    %c0_62 = arith.constant 0 : index
    %87 = vector.load %arg5[%c0_59, %c2_60, %c0_61, %c0_62] : memref<1x3x2x128xf32, #tpu.memory_space<vmem>>, vector<1x1x2x128xf32>
    %88 = vector.shape_cast %87 : vector<1x1x2x128xf32> to vector<2x128xf32>
    %89 = vector.shape_cast %86 : vector<2x128xf32> to vector<1x1x2x128xf32>
    tpu.vector_store %arg5[%c0_59, %c2_60, %c0_61, %c0_62], %89 {strides = array<i32>} : memref<1x3x2x128xf32, #tpu.memory_space<vmem>>, vector<1x1x2x128xf32>,
    return
  }
  func.func @transform_0(%arg0: i32, %arg1: i32) -> (i32, i32, i32, i32) {
    %c0_i32 = arith.constant 0 : i32
    %c0_i32_0 = arith.constant 0 : i32
    %c0_i32_1 = arith.constant 0 : i32
    return %arg0, %c0_i32, %arg1, %c0_i32_0 : i32, i32, i32, i32
  }
  func.func @transform_1(%arg0: i32, %arg1: i32) -> i32 {
    %c0_i32 = arith.constant 0 : i32
    %c0_i32_0 = arith.constant 0 : i32
    return %c0_i32 : i32
  }
  func.func @transform_2(%arg0: i32, %arg1: i32) -> i32 {
    %c0_i32 = arith.constant 0 : i32
    %c0_i32_0 = arith.constant 0 : i32
    return %c0_i32 : i32
  }
  func.func @transform_3(%arg0: i32, %arg1: i32) -> (i32, i32, i32, i32) {
    %c0_i32 = arith.constant 0 : i32
    %c0_i32_0 = arith.constant 0 : i32
    %c0_i32_1 = arith.constant 0 : i32
    return %arg0, %c0_i32, %arg1, %c0_i32_0 : i32, i32, i32, i32
  }
}

</mosaic_0001>

<bundles_post_ra>
// kernel: tpu_custom_call.1
= control target key start
LH: loop header
LB: loop body
LE: loop exit
PB: predicated region body
PF: predicated region fallthrough
CT: control target
= control target key end

     0   :  { %s951_s0 = inlined_call_operand.hbm [shape: f32[2,4,2,128], index: 0, kind: input, shape index: {}]   ;;  %s952_s1 = inlined_call_operand.vmem [shape: f32[12], index: 1, kind: input, shape index: {}]   ;;  %s953_s2 = inlined_call_operand.vmem [shape: f32[3], index: 2, kind: input, shape index: {}]   ;;  %s954_s3 = inlined_call_operand.hbm [shape: f32[2,3,2,128], index: 3, kind: output, shape index: {}]  }
   0x1   :  { %961 = sst [smem:[#allocation14_spill]] %s952_s1 }
   0x2   :  { %8 = vsyncpa [#allocation3], 0 }
   0x3   :  { %10 = vsyncpa [#allocation3 + $0x1], 0 }
   0x4   :  { %11 = vsyncpa [#allocation5], 0 }
   0x5   :  { %12 = vsyncpa [#allocation8], 0 }
   0x6   :  { %13 = vsyncpa [#allocation4], 0 }
   0x7   :  { %15 = vsyncpa [#allocation4 + $0x1], 0  ;;  %s744_s12 = smov 0   ;;  %s746_s13 = smov 0  }
   0x8   :  { %s748_s14 = smov 0   ;;  %s750_s15 = smov 0  }
   0x9   :  { %s752_s16 = smov 0   ;;  %s754_s17 = smov 0  }
   0xa LB: > { %s432_s18 = sadd.s32 4294967295, %s714_s17   ;;  %s433_s19 = sadd.s32 4294967294, %s714_s17   ;;  %s714_s17 = sphi %s754_s17, %s21_s17   ;;  %s710_s16 = sphi %s752_s16, %s982_s16   ;;  %s706_s15 = sphi %s750_s15, %s981_s15   ;;  %s702_s14 = sphi %s748_s14, %s980_s14   ;;  %s698_s13 = sphi %s746_s13, %s979_s13   ;;  %s694_s12 = sphi %s744_s12, %s978_s12  }
   0xb   : > { %s42_s20 = sadd.s32 1, %s702_s14  ;;  %p49_p0 = scmp.ne.s32.totalorder %s702_s14, %s698_s13 }
   0xc   : > { %p50_p1 = scmp.eq.s32.totalorder %s714_s17, 0  ;;  %p55_p2 = scmp.ne.s32.totalorder %s698_s13, %s694_s12 }
   0xd   : > { %p782_p3 = scmp.eq.s32.totalorder %s432_s18, 0  ;;  %p123_p4 = scmp.eq.s32.totalorder %s432_s18, 1 }
   0xe   : > { %p786_p5 = por %p50_p1, %p49_p0  ;;  %p129_p6 = scmp.eq.s32.totalorder %s433_s19, 1 }
   0xf   : > { %s962_s21 = scalar_select %p782_p3, 1, 0 }
  0x10   : > { %p792_p7 = por %p782_p3, %p55_p2  ;;  %p796_p8 = por %p123_p4, %p49_p0 }
  0x11   : > { %p800_p9 = por %p129_p6, %p55_p2  ;;  %p434_p10 = scmp.ge.s32.totalorder %s714_s17, 1 }
  0x12   : > { %s964_s23 = scalar_select %p792_p7, 1, 0 }
  0x13   : > { %s965_s24 = scalar_select %p796_p8, 1, 0 }
  0x14   : > { %s966_s25 = scalar_select %p800_p9, 1, 0 }
  0x15   : > { %p136_p11 = scmp.lt.s32.totalorder %s714_s17, 3  ;;  %s967_s1 = sld [smem:[#allocation14_spill]] }
  0x16   : > { %p504_p0 = scmp.lt.s32.totalorder %s714_s17, 2  ;;  %s160_s5 = sshll.u32 %s953_s2, 4  ;;  %s161_s5 = int_to_ptr.vmem [resolvable:$true] %s160_s5 }
  0x17   : > { %p809_p12 = pnand %p434_p10, %p136_p11 }
  0x18   : > { %p822_p2 = pnand %p504_p0, %p786_p5 }
  0x19   : > { %s968_s29 = scalar_select %p809_p12, 1, 0 }
  0x1a   : > { %p487_p1 = pneg %p809_p12 }
  0x1b   : > { %s149_s28 = sshll.u32 %s967_s1, 4  ;;  %s150_s28 = int_to_ptr.vmem [resolvable:$true] %s149_s28 }
  0x1c   : > { %s969_s6 = scalar_select %p822_p2, 1, 0 }
  0x1d   : > { %p828_p4 = pnand %p487_p1, %p782_p3  ;;  %s568_s8 = scalar_lea.vmem %s150_s28, 16 }
  0x1e   : > { %p569_p6 = scmp.ne.s32.totalorder %s150_s28, %s568_s8  ;;  %p576_p9 = scmp.lt.s32.totalorder %s150_s28, %s150_s28 }
  0x1f   : > { %p570_p10 = pneg %p828_p4  ;;  %p577_p8 = scmp.lt.s32.totalorder %s568_s8, %s568_s8 }
  0x21   : > { %p571_p11 = pnand %p570_p10, %p569_p6  ;;  %p578_p7 = por %p577_p8, %p576_p9 }
  0x23   : > { %p572_p13 = pneg %p571_p11 }
  0x25   : > { %p579_p5 = pnand %p578_p7, %p572_p13 }
  0x27   : > { %582 = shalt.err (!%p579_p5)
}
  0x28   : > { %s716_s9 = smov [#allocation6]   ;;  %s583_s10 = scalar_lea.vmem %s161_s5, 16 }
  0x29   : > { %490 = dma.vmem_to_smem (!%p828_p4), %s150_s28, 16, %s716_s9, [#allocation5]  }
  0x2a   : > { %p584_p0 = scmp.ne.s32.totalorder %s161_s5, %s583_s10  ;;  %p591_p12 = scmp.lt.s32.totalorder %s161_s5, %s161_s5 }
  0x2b   : > { %p592_p2 = scmp.lt.s32.totalorder %s583_s10, %s583_s10 }
  0x2c   : > { %p586_p1 = pnand %p584_p0, %p570_p10 }
  0x2d   : > { %p593_p6 = por %p592_p2, %p591_p12 }
  0x2e   : > { %p587_p3 = pneg %p586_p1 }
  0x30   : > { %p594_p11 = pnand %p593_p6, %p587_p3 }
  0x32   : > { %597 = shalt.err (!%p594_p11)
}
  0x33   : > { %s717_s11 = smov [#allocation7]   ;;  %s33_s18 = sadd.s32 1, %s710_s16 }
  0x34   : > { %493 = dma.vmem_to_smem (!%p828_p4), %s161_s5, 16, %s717_s11, [#allocation8]  }
  0x35   : > { %s171_s19 = sand.u32 1, %s702_s14   ;;  %p35_p7 = scmp.ge.s32.totalorder %s33_s18, 2 }
  0x36   : > { %s438_s22 = sshll.u32 %s171_s19, 3  ;;  %s472_s26 = sshll.u32 %s710_s16, 7 }
  0x37   : > { %s984_s18 = smov (%p35_p7, %s33_s18), 0  ;;  %s182_s30 = scalar_lea.hbm %s951_s0, %s472_s26 }
  0x38   : > { %s37_s4 = ssub.s32 %s710_s16, %s984_s18  ;;  %s175_s7 = scalar_lea.vmem [#allocation2], %s438_s22 }
  0x39   : > { %s183_s8 = sshll.u32 %s175_s7, 4  ;;  %p40_p3 = scmp.eq.s32.totalorder %s37_s4, 0  ;;  %s184_s8 = int_to_ptr.vmem [resolvable:$true] %s183_s8 }
  0x3a   : > { %s172_s5 = scalar_lea.sflag [#allocation3], %s171_s19  ;;  %p971_p8 = scmp.ne.s32.totalorder %s969_s6, 0 }
  0x3b   : > { %s851_s9 = scalar_select %p40_p3, %s702_s14, %s42_s20  }
  0x3c   : > { %p600_p9 = pneg %p971_p8  ;;  %s611_s10 = scalar_lea.vmem %s184_s8, 128 }
  0x3d   : > { %p612_p12 = scmp.ne.s32.totalorder %s184_s8, %s611_s10  ;;  %s718_s11 = smov [#allocation2]  }
  0x3e   : > { %s616_s1 = sshll.u32 %s718_s11, 4  ;;  %s617_s1 = int_to_ptr.vmem [resolvable:$false] %s616_s1 }
  0x3f   : > { %p614_p13 = pnand %p612_p12, %p600_p9  ;;  %s618_s27 = scalar_lea.vmem %s617_s1, 256 }
  0x40   : > { %p619_p4 = scmp.lt.s32.totalorder %s184_s8, %s617_s1  ;;  %p620_p10 = scmp.lt.s32.totalorder %s618_s27, %s611_s10 }
  0x41   : > { %p615_p2 = pneg %p614_p13 }
  0x42   : > { %p621_p5 = por %p620_p10, %p619_p4 }
  0x44   : > { %p622_p0 = pnand %p621_p5, %p615_p2 }
  0x46   : > { %625 = shalt.err (!%p622_p0)
}
  0x47   : > { %s719_s22 = smov 32   ;;  %s720_s20 = smov 2  }
  0x48   : > { %497 = dma.hbm_to_vmem [thread:$0]  (!%p971_p8), %s182_s30, 128, %s184_s8, %s172_s5, %s719_s22, %s719_s22, %s720_s20  }
  0x49   : > { %p972_p1 = scmp.ne.s32.totalorder %s968_s29, 0 }
  0x4a   : > { %s860_s19 = sand.u32 (!%p972_p1), 1, %s698_s13   ;;  %p973_p6 = scmp.ne.s32.totalorder (!%p972_p1), %s964_s23, 0 }
  0x4b   : > { %195 = sbr.rel (%p972_p1) target bundleno = 144 (0x90), region = 32  ;;  %s442_s26 = sshll.u32 (!%p972_p1), %s860_s19, 3 }
  0x4c   : > { %s198_s1 = scalar_lea.sflag (!%p972_p1), [#allocation3], %s860_s19  ;;  %s864_s28 = scalar_lea.vmem (!%p972_p1), [#allocation2], %s442_s26 }
  0x50   : > { %677 = dma.done.wait (%p973_p6), %s198_s1, 128  }
  0x51   : > { %679 = vsyncadd (%p973_p6), %s198_s1, 4294967168  ;;  %p974_p11 = scmp.ne.s32.totalorder %s962_s21, 0 }
  0x53   : > { %681 = dma.done.wait (%p974_p11), [#allocation5], 16  }
  0x54   : > { %683 = vsyncadd (%p974_p11), [#allocation5], 4294967280 }
  0x55   : > { %685 = dma.done.wait (%p974_p11), [#allocation8], 16  }
  0x56   : > { %687 = vsyncadd (%p974_p11), [#allocation8], 4294967280 }
  0x57   : > { %214 = sfence }
  0x58   : > { %s234_s29 = sld [smem:[#allocation6]]  ;;  %v233_v0 = vld [vmem:[%s864_s28] sm:$0x3]  ;;  %v445_v1 = vld [vmem:[%s864_s28 + $0x2] sm:$0x3]  ;;  %s473_s1 = smul.u32 6, %s860_s19 }
  0x59   : > { %s446_s23 = sld [smem:[#allocation6 + $0x1]]  ;;  %v447_v3 = vld [vmem:[%s864_s28 + $0x4] sm:$0x3]  ;;  %v449_v6 = vld [vmem:[%s864_s28 + $0x6] sm:$0x3]  ;;  %p975_p3 = scmp.ne.s32.totalorder %s965_s24, 0 }
  0x5a   : > { %s448_s6 = sld [smem:[#allocation6 + $0x2]]  ;;  %v260_v11 = vld [vmem:[%s864_s28] sm:$0x3]  ;;  %v452_v14 = vld [vmem:[%s864_s28 + $0x2] sm:$0x3] }
  0x5b   : > { %s450_s30 = sld [smem:[#allocation6 + $0x3]]  ;;  %v454_v16 = vld [vmem:[%s864_s28 + $0x4] sm:$0x3]  ;;  %v456_v20 = vld [vmem:[%s864_s28 + $0x6] sm:$0x3] }
  0x5c   : > { %s879_s4 = sld [smem:[#allocation7]]  ;;  %v285_v27 = vld [vmem:[%s864_s28] sm:$0x3]  ;;  %v461_v30 = vld [vmem:[%s864_s28 + $0x2] sm:$0x3] }
  0x5d   : > { %s451_s7 = sld [smem:[#allocation6 + $0x4]]  ;;  %v463_v33 = vld [vmem:[%s864_s28 + $0x4] sm:$0x3]  ;;  %v465_v37 = vld [vmem:[%s864_s28 + $0x6] sm:$0x3]  ;;  %s232_s28 = scalar_lea.vmem [#allocation9], %s473_s1 }
  0x5e   : > { %v235_v2 = vstv %s234_s29  ;;  %s453_s21 = sld [smem:[#allocation6 + $0x5]]  ;;  %s325_s29 = sshll.u32 %s232_s28, 4  ;;  %s898_s29 = int_to_ptr.vmem [resolvable:$true] %s325_s29 }
  0x5f   : > { %v236_v4 = vmul.f32 %v235_v2, %v233_v0  ;;  %v240_v5 = vstv %s446_s23  ;;  %s455_s8 = sld [smem:[#allocation6 + $0x6]]  ;;  %s474_s23 = smul.u32 96, %s706_s15 }
  0x60   : > { %v241_v7 = vmul.f32 %v445_v1, %v240_v5  ;;  %v246_v8 = vstv %s448_s6  ;;  %s457_s5 = sld [smem:[#allocation6 + $0x7]]  ;;  %s721_s15 = smov [#allocation9]  }
  0x61   : > { %v247_v9 = vmul.f32 %v447_v3, %v246_v8  ;;  %v252_v10 = vstv %s450_s30  ;;  %s885_s10 = sld [smem:[#allocation7 + $0x1]] }
  0x62   : > { %v242_v12 = vadd.f32 %v241_v7, %v236_v4  ;;  %v253_v13 = vmul.f32 %v449_v6, %v252_v10  ;;  %s460_s11 = sld [smem:[#allocation6 + $0x8]]  ;;  %v256_v21 = vstv %s879_s4  ;;  %s903_s4 = scalar_lea.hbm %s954_s3, %s474_s23 }
  0x63   : > { %v262_v15 = vstv %s451_s7  ;;  %s462_s27 = sld [smem:[#allocation6 + $0x9]]  ;;  %s311_s7 = scalar_lea.sflag [#allocation4], %s860_s19 }
  0x64   : > { %v248_v17 = vadd.f32 %v247_v9, %v242_v12  ;;  %v263_v18 = vmul.f32 %v262_v15, %v260_v11  ;;  %v266_v19 = vstv %s453_s21  ;;  %s464_s22 = sld [smem:[#allocation6 + $0xa]]  ;;  %s626_s21 = scalar_lea.vmem %s898_s29, 96 }
  0x65   : > { %v267_v22 = vmul.f32 %v452_v14, %v266_v19  ;;  %v271_v23 = vstv %s455_s8  ;;  %s466_s20 = sld [smem:[#allocation6 + $0xb]]  ;;  %p627_p7 = scmp.ne.s32.totalorder %s898_s29, %s626_s21 }
  0x66   : > { %v254_v24 = vadd.f32 %v253_v13, %v248_v17  ;;  %v272_v25 = vmul.f32 %v454_v16, %v271_v23  ;;  %v276_v26 = vstv %s457_s5  ;;  %s467_s26 = sld [smem:[#allocation7 + $0x2]]  ;;  %s630_s8 = sshll.u32 %s721_s15, 4  ;;  %s631_s8 = int_to_ptr.vmem [resolvable:$false] %s630_s8 }
  0x67   : > { %v268_v28 = vadd.f32 %v267_v22, %v263_v18  ;;  %v277_v29 = vmul.f32 %v456_v20, %v276_v26  ;;  %v280_v38 = vstv %s885_s10  ;;  %p628_p8 = pnand %p627_p7, %p975_p3  ;;  %s632_s5 = scalar_lea.vmem %s631_s8, 192 }
  0x68   : > { %v257_v31 = vadd.f32 %v256_v21, %v254_v24  ;;  %v287_v32 = vstv %s460_s11  ;;  %p633_p12 = scmp.lt.s32.totalorder %s898_s29, %s631_s8  ;;  %p634_p13 = scmp.lt.s32.totalorder %s632_s5, %s626_s21 }
  0x69   : > { %v273_v34 = vadd.f32 %v272_v25, %v268_v28  ;;  %v288_v35 = vmul.f32 %v287_v32, %v285_v27  ;;  %v291_v36 = vstv %s462_s27  ;;  %p629_p9 = pneg %p628_p8 }
  0x6a   : > { %562 = vtanh.f32 %v257_v31  ;;  %v292_v39 = vmul.f32 %v461_v30, %v291_v36  ;;  %v296_v40 = vstv %s464_s22  ;;  %p635_p2 = por %p634_p13, %p633_p12 }
  0x6b   : > { %v278_v41 = vadd.f32 %v277_v29, %v273_v34  ;;  %v297_v42 = vmul.f32 %v463_v33, %v296_v40  ;;  %v301_v43 = vstv %s466_s20 }
  0x6c   : > { %v293_v44 = vadd.f32 %v292_v39, %v288_v35  ;;  %v302_v45 = vmul.f32 %v465_v37, %v301_v43  ;;  %v305_v48 = vstv %s467_s26  ;;  %p636_p4 = pnand %p635_p2, %p629_p9 }
  0x6d   : > { %v281_v46 = vadd.f32 %v280_v38, %v278_v41 }
  0x6e   : > { %v298_v47 = vadd.f32 %v297_v42, %v293_v44 }
  0x6f   : > { %564 = vtanh.f32 %v281_v46 }
  0x70   : > { %v303_v49 = vadd.f32 %v302_v45, %v298_v47 }
  0x72   : > { %v306_v50 = vadd.f32 %v305_v48, %v303_v49 }
  0x74   : > { %566 = vtanh.f32 %v306_v50 }
  0x77   : > { %v563_v51 = vpop.eup %562 }
  0x78   : > { %259 = vst [vmem:[%s232_s28] sm:$0x3] %v563_v51 }
  0x7c   : > { %v565_v52 = vpop.eup %564 }
  0x7d   : > { %459 = vst [vmem:[%s232_s28 + $0x2] sm:$0x3] %v565_v52 }
  0x81   : > { %v567_v53 = vpop.eup %566 }
  0x82   : > { %468 = vst [vmem:[%s232_s28 + $0x4] sm:$0x3] %v567_v53 }
  0x83   : > { %639 = shalt.err (!%p636_p4)
}
  0x84   : > { %s640_s10 = scalar_lea.hbm %s903_s4, 96  ;;  %s644_s22 = scalar_lea.hbm %s954_s3, 192 }
  0x85   : > { %p641_p10 = scmp.ne.s32.totalorder %s903_s4, %s640_s10  ;;  %p645_p1 = scmp.lt.s32.totalorder %s903_s4, %s954_s3 }
  0x86   : > { %p646_p6 = scmp.lt.s32.totalorder %s644_s22, %s640_s10 }
  0x87   : > { %p642_p5 = pnand %p641_p10, %p975_p3 }
  0x88   : > { %p647_p11 = por %p646_p6, %p645_p1 }
  0x89   : > { %p643_p0 = pneg %p642_p5 }
  0x8b   : > { %p648_p7 = pnand %p647_p11, %p643_p0 }
  0x8d   : > { %651 = shalt.err (!%p648_p7)
}
  0x8e   : > { %s722_s1 = smov 32   ;;  %s723_s28 = smov 2  }
  0x8f   : > { %485 = dma.vmem_to_hbm [thread:$0]  (%p975_p3), %s898_s29, 96, %s903_s4, %s311_s7, %s722_s1, %s722_s1, %s723_s28  }
  0x90 PF: > { %s340_s23 = sand.u32 1, %s694_s12   ;;  %p976_p8 = scmp.ne.s32.totalorder %s966_s25, 0 }
  0x91   : > { %p977_p9 = scmp.ge.s32.totalorder %s714_s17, 2  ;;  %s341_s6 = scalar_lea.sflag [#allocation4], %s340_s23 }
  0x93   : > { %p499_p12 = pnand %p977_p9, %p976_p8 }
  0x95   : > { %p500_p13 = pneg %p499_p12 }
  0x97   : > { %689 = dma.done.wait (%p500_p13), %s341_s6, 96  }
  0x98   : > { %691 = vsyncadd (%p500_p13), %s341_s6, 4294967200  ;;  %s21_s17 = sadd.s32 1, %s714_s17   ;;  %s978_s12 = smov %s698_s13 }
  0x99   : > { %p18_p2 = scmp.ge.s32.totalorder %s21_s17, 4   ;;  %s979_s13 = smov %s702_s14 }
  0x9a   : > { %s980_s14 = smov %s851_s9  ;;  %s981_s15 = smov %s710_s16 }
  0x9b   : > { %s982_s16 = smov %s984_s18  ;;  %20 = sbr.rel (!%p18_p2) target bundleno = 10 (0xa), region = 91 }
  0xa0   :  { %346 = vsyncpa [#allocation3], 1 }
  0xa1   :  { %348 = vsyncpa [#allocation3 + $0x1], 1 }
  0xa2   :  { %349 = vsyncpa [#allocation4], 1 }
  0xa3   :  { %351 = vsyncpa [#allocation4 + $0x1], 1 }
  0xa4   :  { %352 = vsyncpa [#allocation5], 1 }
  0xa5   :  { %354 = vsyncpa [#allocation5 + $0x1], 1 }
  0xa6   :  { %355 = vsyncpa [#allocation8], 1 }

</bundles_post_ra>
